<compile_context>
chip_gen: v7x
topology: tpu7x:2x2x1
jax: 0.10.0
libtpu: 0.0.40
codegen_flags: <defaults>
</compile_context>

<pallas_src>
import jax
import jax.numpy as jnp
from jax.experimental import pallas as pl
from jax.experimental.pallas import tpu as pltpu


def _round_up(x, m):
    return ((x + m - 1) // m) * m


def _pick_hw_tile(hw_pad, c, bt, itemsize, target_bytes=2 * 1024 * 1024):
    """Largest multiple of 128 dividing hw_pad whose x-block stays under target_bytes."""
    best = 128
    t = 128
    while t <= hw_pad:
        if hw_pad % t == 0 and bt * c * t * itemsize <= target_bytes:
            best = t
        t += 128
    return best


def channel_gate(x, w1_t, b1, w2_t, b2, *, hw_tile=None, b_tile=1):
    """CBAM ChannelGate forward.

    x:    (B, C, H, W)            activation (any float dtype; upcast on-chip)
    w1_t: (C, Hid)                first Linear weight, pre-transposed
    b1:   (Hid,)
    w2_t: (Hid, C)                second Linear weight, pre-transposed
    b2:   (C,)
    Returns sigmoid gate of shape (B, C, 1, 1)  (same as the torch module).
    """
    B, C, H, W = x.shape
    hid = w1_t.shape[1]
    HW = H * W

    x_r = x.reshape(B, C, HW)

    # Pad the spatial (lane) axis to a multiple of 128; padding is masked in-kernel.
    HW_pad = _round_up(HW, 128)
    if HW_pad != HW:
        x_r = jnp.pad(x_r, ((0, 0), (0, 0), (0, HW_pad - HW)))

    bt = min(b_tile, B)
    assert B % bt == 0
    if hw_tile is None:
        hw_tile = _pick_hw_tile(HW_pad, C, bt, x_r.dtype.itemsize)
    assert hw_tile % 128 == 0 and HW_pad % hw_tile == 0
    n_hw = HW_pad // hw_tile
    needs_mask = HW_pad != HW

    w1_r = w1_t.astype(jnp.float32)
    w2_r = w2_t.astype(jnp.float32)
    b1_r = b1.reshape(1, hid).astype(jnp.float32)
    b2_r = b2.reshape(1, C).astype(jnp.float32)

    inv_hw = 1.0 / float(HW)

    def kernel(x_ref, w1_ref, b1_ref, w2_ref, b2_ref, out_ref, sum_acc, max_acc):
        s = pl.program_id(1)
        n_s = pl.num_programs(1)

        @pl.when(s == 0)
        def _init():
            sum_acc[...] = jnp.zeros_like(sum_acc)
            max_acc[...] = jnp.full(max_acc.shape, -jnp.inf, dtype=max_acc.dtype)

        xt = x_ref[...].astype(jnp.float32)  # (bt, C, hw_tile)
        if needs_mask:
            lane = jax.lax.broadcasted_iota(jnp.int32, xt.shape, dimension=2)
            valid = (s * hw_tile + lane) < HW
            x_sum = jnp.where(valid, xt, 0.0)
            x_max = jnp.where(valid, xt, -jnp.inf)
        else:
            x_sum = xt
            x_max = xt

        # Pure VPU elementwise accumulation per tile; the single cross-lane
        # reduce per output block is deferred to the finalize step.
        sum_acc[...] += x_sum
        max_acc[...] = jnp.maximum(max_acc[...], x_max)

        @pl.when(s == n_s - 1)
        def _finalize():
            avg_pool = jnp.sum(sum_acc[...], axis=-1) * inv_hw   # (bt, C)
            max_pool = jnp.max(max_acc[...], axis=-1)            # (bt, C)
            # Fuse both MLP evaluations into a single matmul pair.
            pools = jnp.concatenate([avg_pool, max_pool], axis=0)  # (2*bt, C)
            h = jnp.dot(pools, w1_ref[...], preferred_element_type=jnp.float32)
            h = jnp.maximum(h + b1_ref[...], 0.0)                  # (2*bt, Hid)
            att = jnp.dot(h, w2_ref[...], preferred_element_type=jnp.float32)
            att = att + b2_ref[...]                                # (2*bt, C)
            att_sum = att[:bt] + att[bt:]                          # (bt, C)
            # sigmoid: exp + approx reciprocal both land on the EUP slot.
            sig = pl.reciprocal(1.0 + jnp.exp(-att_sum), approx=True)
            out_ref[...] = jnp.reshape(sig, (bt, 1, C)).astype(out_ref.dtype)

    grid = (B // bt, n_hw)

    x_spec = pl.BlockSpec((bt, C, hw_tile), lambda b, s: (b, 0, s))
    w1_spec = pl.BlockSpec((C, hid), lambda b, s: (0, 0))
    b1_spec = pl.BlockSpec((1, hid), lambda b, s: (0, 0))
    w2_spec = pl.BlockSpec((hid, C), lambda b, s: (0, 0))
    b2_spec = pl.BlockSpec((1, C), lambda b, s: (0, 0))
    out_spec = pl.BlockSpec((bt, 1, C), lambda b, s: (b, 0, 0))

    bytes_accessed = int(
        x_r.size * x_r.dtype.itemsize
        + B * C * 4
        + (w1_r.size + w2_r.size + b1_r.size + b2_r.size) * 4
    )
    cost = pl.CostEstimate(
        flops=int(2 * B * C * HW_pad + 2 * (2 * B) * C * hid * 2),
        transcendentals=int(B * C),
        bytes_accessed=bytes_accessed,
    )

    out = pl.pallas_call(
        kernel,
        out_shape=jax.ShapeDtypeStruct((B, 1, C), jnp.float32),
        grid_spec=pltpu.PrefetchScalarGridSpec(
            num_scalar_prefetch=0,
            grid=grid,
            in_specs=[x_spec, w1_spec, b1_spec, w2_spec, b2_spec],
            out_specs=out_spec,
            scratch_shapes=[
                pltpu.VMEM((bt, C, hw_tile), jnp.float32),  # running sum
                pltpu.VMEM((bt, C, hw_tile), jnp.float32),  # running max
            ],
        ),
        compiler_params=pltpu.CompilerParams(
            dimension_semantics=("parallel", "arbitrary"),
        ),
        cost_estimate=cost,
    )(x_r, w1_r, b1_r, w2_r, b2_r)

    return out.reshape(B, C, 1, 1)


if __name__ == "__main__":
    # Module config: gate_channels=64, reduction_ratio=16 -> hidden=4,
    # pool_types=['avg', 'max'].
    gate_channels = 64
    reduction_ratio = 16
    hidden = gate_channels // reduction_ratio

    key = jax.random.PRNGKey(0)
    kx, k1, k2, k3, k4, kx2 = jax.random.split(key, 6)

    # PyTorch Linear weights are (out_features, in_features); pre-transpose so
    # the kernel computes v @ W^T as v @ w_t directly.
    w1 = jax.random.normal(k1, (hidden, gate_channels), dtype=jnp.float32) * 0.1
    b1 = jax.random.normal(k2, (hidden,), dtype=jnp.float32) * 0.1
    w2 = jax.random.normal(k3, (gate_channels, hidden), dtype=jnp.float32) * 0.1
    b2 = jax.random.normal(k4, (gate_channels,), dtype=jnp.float32) * 0.1

    def ref_gate(x):
        avg_p = jnp.mean(x, axis=(2, 3))
        max_p = jnp.max(x, axis=(2, 3))

        def mlp(v):
            return jnp.maximum(v @ w1.T + b1, 0.0) @ w2.T + b2

        return jax.nn.sigmoid(mlp(avg_p) + mlp(max_p))[:, :, None, None]

    ok = True

    # Case 1: HW multiple of 128, default tile (single HW step).
    x1 = jax.random.normal(kx, (2, gate_channels, 16, 16), dtype=jnp.float32)
    out1 = jax.block_until_ready(channel_gate(x1, w1.T, b1, w2.T, b2))
    ok &= out1.shape == (2, gate_channels, 1, 1)
    ok &= bool(jnp.allclose(out1, ref_gate(x1), atol=2e-3, rtol=2e-3))

    # Case 2: force multiple HW tiles (exercises cross-tile sum/max accumulation).
    out2 = jax.block_until_ready(channel_gate(x1, w1.T, b1, w2.T, b2, hw_tile=128))
    ok &= bool(jnp.allclose(out2, ref_gate(x1), atol=2e-3, rtol=2e-3))

    # Case 3: ragged spatial size (HW=81 -> padded to 128, masked last tile).
    x3 = jax.random.normal(kx2, (2, gate_channels, 9, 9), dtype=jnp.float32)
    out3 = jax.block_until_ready(channel_gate(x3, w1.T, b1, w2.T, b2))
    ok &= bool(jnp.allclose(out3, ref_gate(x3), atol=2e-3, rtol=2e-3))

    if ok:
        print("KERNEL_OK")
    else:
        raise SystemExit("kernel output mismatch vs reference")
</pallas_src>

<mosaic_0001>
module attributes {stable_mosaic.version = 11 : i64} {
  func.func @kernel(%arg0: i32, %arg1: i32, %arg2: memref<1x64x256xf32, #tpu.memory_space<vmem>>, %arg3: memref<64x4xf32, #tpu.memory_space<vmem>>, %arg4: memref<1x4xf32, #tpu.memory_space<vmem>>, %arg5: memref<4x64xf32, #tpu.memory_space<vmem>>, %arg6: memref<1x64xf32, #tpu.memory_space<vmem>>, %arg7: memref<1x1x64xf32, #tpu.memory_space<vmem>>, %arg8: memref<1x64x256xf32, #tpu.memory_space<vmem>>, %arg9: memref<1x64x256xf32, #tpu.memory_space<vmem>>) attributes {dimension_semantics = [#tpu.dimension_semantics<parallel>, #tpu.dimension_semantics<arbitrary>], iteration_bounds = array<i64: 2, 1>, scalar_prefetch = 0 : i64, scratch_operands = 2 : i64, tpu.core_type = #tpu.core_type<tc>, window_params = [{transform_indices = @transform_0, window_bounds = array<i64: 1, 64, 256>}, {pipeline_mode = #tpu.pipeline_mode<synchronous>, transform_indices = @transform_1, window_bounds = array<i64: 64, 4>}, {pipeline_mode = #tpu.pipeline_mode<synchronous>, transform_indices = @transform_2, window_bounds = array<i64: 1, 4>}, {pipeline_mode = #tpu.pipeline_mode<synchronous>, transform_indices = @transform_3, window_bounds = array<i64: 4, 64>}, {pipeline_mode = #tpu.pipeline_mode<synchronous>, transform_indices = @transform_4, window_bounds = array<i64: 1, 64>}, {transform_indices = @transform_5, window_bounds = array<i64: 1, 1, 64>}]} {
    %c0_i32 = arith.constant 0 : i32
    %0 = arith.cmpi eq, %arg1, %c0_i32 : i32
    %1 = arith.extui %0 : i1 to i32
    %c0_i32_0 = arith.constant 0 : i32
    %2 = arith.cmpi ne, %1, %c0_i32_0 : i32
    scf.if %2 {
      %cst = arith.constant 0.000000e+00 : f32
      %13 = vector.broadcast %cst : f32 to vector<1x64x256xf32>
      %c0_17 = arith.constant 0 : index
      %c0_18 = arith.constant 0 : index
      %c0_19 = arith.constant 0 : index
      %14 = vector.load %arg8[%c0_17, %c0_18, %c0_19] : memref<1x64x256xf32, #tpu.memory_space<vmem>>, vector<1x64x256xf32>
      tpu.vector_store %arg8[%c0_17, %c0_18, %c0_19], %13 {strides = array<i32>} : memref<1x64x256xf32, #tpu.memory_space<vmem>>, vector<1x64x256xf32>,
      %cst_20 = arith.constant 0xFF800000 : f32
      %15 = vector.broadcast %cst_20 : f32 to vector<1x64x256xf32>
      %c0_21 = arith.constant 0 : index
      %c0_22 = arith.constant 0 : index
      %c0_23 = arith.constant 0 : index
      %16 = vector.load %arg9[%c0_21, %c0_22, %c0_23] : memref<1x64x256xf32, #tpu.memory_space<vmem>>, vector<1x64x256xf32>
      tpu.vector_store %arg9[%c0_21, %c0_22, %c0_23], %15 {strides = array<i32>} : memref<1x64x256xf32, #tpu.memory_space<vmem>>, vector<1x64x256xf32>,
    } else {
    }
    %c0 = arith.constant 0 : index
    %c0_1 = arith.constant 0 : index
    %c0_2 = arith.constant 0 : index
    %3 = vector.load %arg2[%c0, %c0_1, %c0_2] : memref<1x64x256xf32, #tpu.memory_space<vmem>>, vector<1x64x256xf32>
    %c0_3 = arith.constant 0 : index
    %c0_4 = arith.constant 0 : index
    %c0_5 = arith.constant 0 : index
    %4 = vector.load %arg8[%c0_3, %c0_4, %c0_5] : memref<1x64x256xf32, #tpu.memory_space<vmem>>, vector<1x64x256xf32>
    %5 = arith.addf %4, %3 : vector<1x64x256xf32>
    %c0_6 = arith.constant 0 : index
    %c0_7 = arith.constant 0 : index
    %c0_8 = arith.constant 0 : index
    %6 = vector.load %arg8[%c0_6, %c0_7, %c0_8] : memref<1x64x256xf32, #tpu.memory_space<vmem>>, vector<1x64x256xf32>
    tpu.vector_store %arg8[%c0_6, %c0_7, %c0_8], %5 {strides = array<i32>} : memref<1x64x256xf32, #tpu.memory_space<vmem>>, vector<1x64x256xf32>,
    %c0_9 = arith.constant 0 : index
    %c0_10 = arith.constant 0 : index
    %c0_11 = arith.constant 0 : index
    %7 = vector.load %arg9[%c0_9, %c0_10, %c0_11] : memref<1x64x256xf32, #tpu.memory_space<vmem>>, vector<1x64x256xf32>
    %8 = arith.maximumf %7, %3 : vector<1x64x256xf32>
    %c0_12 = arith.constant 0 : index
    %c0_13 = arith.constant 0 : index
    %c0_14 = arith.constant 0 : index
    %9 = vector.load %arg9[%c0_12, %c0_13, %c0_14] : memref<1x64x256xf32, #tpu.memory_space<vmem>>, vector<1x64x256xf32>
    tpu.vector_store %arg9[%c0_12, %c0_13, %c0_14], %8 {strides = array<i32>} : memref<1x64x256xf32, #tpu.memory_space<vmem>>, vector<1x64x256xf32>,
    %c0_i32_15 = arith.constant 0 : i32
    %10 = arith.cmpi eq, %arg1, %c0_i32_15 : i32
    %11 = arith.extui %10 : i1 to i32
    %c0_i32_16 = arith.constant 0 : i32
    %12 = arith.cmpi ne, %11, %c0_i32_16 : i32
    scf.if %12 {
      %c0_17 = arith.constant 0 : index
      %c0_18 = arith.constant 0 : index
      %c0_19 = arith.constant 0 : index
      %13 = vector.load %arg8[%c0_17, %c0_18, %c0_19] : memref<1x64x256xf32, #tpu.memory_space<vmem>>, vector<1x64x256xf32>
      %cst = arith.constant dense<0.000000e+00> : vector<1x64xf32>
      %14 = vector.multi_reduction <add>, %13, %cst [2] : vector<1x64x256xf32> to vector<1x64xf32>
      %cst_20 = arith.constant 3.906250e-03 : f32
      %15 = vector.broadcast %cst_20 : f32 to vector<1x64xf32>
      %16 = arith.mulf %14, %15 : vector<1x64xf32>
      %c0_21 = arith.constant 0 : index
      %c0_22 = arith.constant 0 : index
      %c0_23 = arith.constant 0 : index
      %17 = vector.load %arg9[%c0_21, %c0_22, %c0_23] : memref<1x64x256xf32, #tpu.memory_space<vmem>>, vector<1x64x256xf32>
      %cst_24 = arith.constant dense<0xFF800000> : vector<1x64xf32>
      %18 = vector.multi_reduction <maximumf>, %17, %cst_24 [2] : vector<1x64x256xf32> to vector<1x64xf32>
      %19 = tpu.concatenate %16, %18 in 0 : vector<1x64xf32>, vector<1x64xf32> -> vector<2x64xf32>
      %c0_25 = arith.constant 0 : index
      %c0_26 = arith.constant 0 : index
      %20 = vector.load %arg3[%c0_25, %c0_26] : memref<64x4xf32, #tpu.memory_space<vmem>>, vector<64x4xf32>
      %cst_27 = arith.constant dense<0.000000e+00> : vector<2x4xf32>
      %21 = tpu.matmul %19, %20, %cst_27 {dimension_numbers = #tpu.dot_dimension_numbers<[1], [0], [0], [1], [0, 0, 1, 1], [], []>} : vector<2x64xf32>, vector<64x4xf32>, vector<2x4xf32> -> vector<2x4xf32>
      %c0_28 = arith.constant 0 : index
      %c0_29 = arith.constant 0 : index
      %22 = vector.load %arg4[%c0_28, %c0_29] : memref<1x4xf32, #tpu.memory_space<vmem>>, vector<1x4xf32>
      %23 = vector.broadcast %22 : vector<1x4xf32> to vector<2x4xf32>
      %24 = arith.addf %21, %23 : vector<2x4xf32>
      %cst_30 = arith.constant 0.000000e+00 : f32
      %25 = vector.broadcast %cst_30 : f32 to vector<2x4xf32>
      %26 = arith.maximumf %24, %25 : vector<2x4xf32>
      %c0_31 = arith.constant 0 : index
      %c0_32 = arith.constant 0 : index
      %27 = vector.load %arg5[%c0_31, %c0_32] : memref<4x64xf32, #tpu.memory_space<vmem>>, vector<4x64xf32>
      %cst_33 = arith.constant dense<0.000000e+00> : vector<2x64xf32>
      %28 = tpu.matmul %26, %27, %cst_33 {dimension_numbers = #tpu.dot_dimension_numbers<[1], [0], [0], [1], [0, 0, 1, 1], [], []>} : vector<2x4xf32>, vector<4x64xf32>, vector<2x64xf32> -> vector<2x64xf32>
      %c0_34 = arith.constant 0 : index
      %c0_35 = arith.constant 0 : index
      %29 = vector.load %arg6[%c0_34, %c0_35] : memref<1x64xf32, #tpu.memory_space<vmem>>, vector<1x64xf32>
      %30 = vector.broadcast %29 : vector<1x64xf32> to vector<2x64xf32>
      %31 = arith.addf %28, %30 : vector<2x64xf32>
      %32 = vector.extract_strided_slice %31 {offsets = [0, 0], sizes = [1, 64], strides = [1, 1]} : vector<2x64xf32> to vector<1x64xf32>
      %33 = vector.extract_strided_slice %31 {offsets = [1, 0], sizes = [1, 64], strides = [1, 1]} : vector<2x64xf32> to vector<1x64xf32>
      %34 = arith.addf %32, %33 : vector<1x64xf32>
      %cst_36 = arith.constant 0.000000e+00 : f32
      %35 = vector.broadcast %cst_36 : f32 to vector<1x64xf32>
      %36 = arith.subf %35, %34 : vector<1x64xf32>
      %37 = math.exp %36 : vector<1x64xf32>
      %cst_37 = arith.constant 1.000000e+00 : f32
      %38 = vector.broadcast %cst_37 : f32 to vector<1x64xf32>
      %39 = arith.addf %38, %37 : vector<1x64xf32>
      %40 = tpu.reciprocal %39 {approx = true} : vector<1x64xf32> -> vector<1x64xf32>
      %41 = vector.shape_cast %40 : vector<1x64xf32> to vector<1x1x64xf32>
      %c0_38 = arith.constant 0 : index
      %c0_39 = arith.constant 0 : index
      %c0_40 = arith.constant 0 : index
      %42 = vector.load %arg7[%c0_38, %c0_39, %c0_40] : memref<1x1x64xf32, #tpu.memory_space<vmem>>, vector<1x1x64xf32>
      tpu.vector_store %arg7[%c0_38, %c0_39, %c0_40], %41 {strides = array<i32>} : memref<1x1x64xf32, #tpu.memory_space<vmem>>, vector<1x1x64xf32>,
    } else {
    }
    return
  }
  func.func @transform_0(%arg0: i32, %arg1: i32) -> (i32, i32, i32) {
    %c0_i32 = arith.constant 0 : i32
    %c0_i32_0 = arith.constant 0 : i32
    return %arg0, %c0_i32, %arg1 : i32, i32, i32
  }
  func.func @transform_1(%arg0: i32, %arg1: i32) -> (i32, i32) {
    %c0_i32 = arith.constant 0 : i32
    %c0_i32_0 = arith.constant 0 : i32
    %c0_i32_1 = arith.constant 0 : i32
    return %c0_i32, %c0_i32_0 : i32, i32
  }
  func.func @transform_2(%arg0: i32, %arg1: i32) -> (i32, i32) {
    %c0_i32 = arith.constant 0 : i32
    %c0_i32_0 = arith.constant 0 : i32
    %c0_i32_1 = arith.constant 0 : i32
    return %c0_i32, %c0_i32_0 : i32, i32
  }
  func.func @transform_3(%arg0: i32, %arg1: i32) -> (i32, i32) {
    %c0_i32 = arith.constant 0 : i32
    %c0_i32_0 = arith.constant 0 : i32
    %c0_i32_1 = arith.constant 0 : i32
    return %c0_i32, %c0_i32_0 : i32, i32
  }
  func.func @transform_4(%arg0: i32, %arg1: i32) -> (i32, i32) {
    %c0_i32 = arith.constant 0 : i32
    %c0_i32_0 = arith.constant 0 : i32
    %c0_i32_1 = arith.constant 0 : i32
    return %c0_i32, %c0_i32_0 : i32, i32
  }
  func.func @transform_5(%arg0: i32, %arg1: i32) -> (i32, i32, i32) {
    %c0_i32 = arith.constant 0 : i32
    %c0_i32_0 = arith.constant 0 : i32
    %c0_i32_1 = arith.constant 0 : i32
    return %arg0, %c0_i32, %c0_i32_0 : i32, i32, i32
  }
}

</mosaic_0001>

<bundles_post_ra>
// kernel: tpu_custom_call.1
= control target key start
LH: loop header
LB: loop body
LE: loop exit
PB: predicated region body
PF: predicated region fallthrough
CT: control target
= control target key end

     0   :  { %10 = vsyncpa [#allocation5], 0  ;;  %s1409_s0 = inlined_call_operand.hbm [shape: f32[2,64,256], index: 0, kind: input, shape index: {}]   ;;  %s1410_s1 = inlined_call_operand.vmem [shape: f32[64,4], index: 1, kind: input, shape index: {}]   ;;  %s1411_s2 = inlined_call_operand.vmem [shape: f32[1,4], index: 2, kind: input, shape index: {}]   ;;  %s1412_s3 = inlined_call_operand.vmem [shape: f32[4,64], index: 3, kind: input, shape index: {}]   ;;  %s1413_s4 = inlined_call_operand.vmem [shape: f32[1,64], index: 4, kind: input, shape index: {}]   ;;  %s1414_s5 = inlined_call_operand.hbm [shape: f32[2,1,64], index: 5, kind: output, shape index: {}]  }
   0x1   :  { %12 = vsyncpa [#allocation5 + $0x1], 0 }
   0x2   :  { %13 = vsyncpa [#allocation6], 0 }
   0x3   :  { %15 = vsyncpa [#allocation6 + $0x1], 0  ;;  %s1176_s18 = smov 0   ;;  %s1178_s19 = smov 0  }
   0x4   :  { %s1180_s20 = smov 0   ;;  %s1182_s21 = smov 0  }
   0x5   :  { %s1184_s22 = smov 0   ;;  %s1186_s23 = smov 0  }
   0x6 LB: > { %s889_s24 = sadd.s32 4294967295, %s1137_s23   ;;  %s890_s25 = sadd.s32 4294967294, %s1137_s23   ;;  %s1137_s23 = sphi %s1186_s23, %s21_s23   ;;  %s1133_s22 = sphi %s1184_s22, %s1429_s22   ;;  %s1129_s21 = sphi %s1182_s21, %s1428_s21   ;;  %s1125_s20 = sphi %s1180_s20, %s1427_s20   ;;  %s1121_s19 = sphi %s1178_s19, %s1426_s19   ;;  %s1117_s18 = sphi %s1176_s18, %s1425_s18  }
   0x7   : > { %s33_s26 = sadd.s32 1, %s1133_s22  ;;  %s42_s27 = sadd.s32 1, %s1125_s20 }
   0x8   : > { %p35_p0 = scmp.ge.s32.totalorder %s33_s26, 2  ;;  %p49_p1 = scmp.ne.s32.totalorder %s1125_s20, %s1121_s19 }
   0x9   : > { %p50_p2 = scmp.eq.s32.totalorder %s1137_s23, 0  ;;  %p55_p3 = scmp.ne.s32.totalorder %s1121_s19, %s1117_s18 }
   0xa   : > { %s1431_s26 = smov (%p35_p0, %s33_s26), 0  ;;  %p56_p5 = scmp.eq.s32.totalorder %s889_s24, 0 }
   0xb   : > { %p1217_p4 = por %p50_p2, %p49_p1  ;;  %s37_s29 = ssub.s32 %s1133_s22, %s1431_s26 }
   0xc   : > { %p163_p6 = scmp.eq.s32.totalorder %s889_s24, 1  ;;  %p40_p7 = scmp.eq.s32.totalorder %s37_s29, 0 }
   0xd   : > { %p1223_p8 = por %p56_p5, %p55_p3  ;;  %p169_p10 = scmp.eq.s32.totalorder %s890_s25, 1 }
   0xe   : > { %p1227_p9 = por %p163_p6, %p49_p1  ;;  %p966_p13 = scmp.lt.s32.totalorder %s1137_s23, 2 }
   0xf   : > { %s1232_s7 = scalar_select %p40_p7, %s1125_s20, %s42_s27  }
  0x10   : > { %s1418_s6 = scalar_select %p1227_p9, 1, 0 }
  0x11   : > { %p1234_p11 = por %p169_p10, %p55_p3  ;;  %s201_s9 = sand.u32 1, %s1125_s20  }
  0x12   : > { %s893_s10 = sshll.u32 %s201_s9, 7  ;;  %s906_s11 = sshll.u32 %s1133_s22, 11 }
  0x13   : > { %s1419_s8 = scalar_select %p1234_p11, 1, 0 }
  0x14   : > { %s1245_s14 = scalar_lea.hbm %s1409_s0, %s906_s11  ;;  %s205_s15 = scalar_lea.vmem [#allocation4], %s893_s10 }
  0x15   : > { %s214_s16 = sshll.u32 %s205_s15, 4  ;;  %p1251_p0 = pnand %p966_p13, %p1217_p4  ;;  %s1247_s16 = int_to_ptr.vmem [resolvable:$true] %s214_s16 }
  0x16   : > { %s1256_s24 = scalar_lea.sflag [#allocation5], %s201_s9  ;;  %s1025_s25 = scalar_lea.hbm %s1245_s14, 2048 }
  0x17   : > { %p1026_p2 = scmp.ne.s32.totalorder %s1245_s14, %s1025_s25  ;;  %p1027_p3 = pneg %p1251_p0 }
  0x18   : > { %s1030_s28 = scalar_lea.hbm %s1409_s0, 4096  ;;  %p1031_p4 = scmp.lt.u32.totalorder %s1245_s14, %s1409_s0 }
  0x19   : > { %p1028_p5 = pnand %p1027_p3, %p1026_p2  ;;  %p1032_p7 = scmp.lt.u32.totalorder %s1030_s28, %s1025_s25 }
  0x1a   : > { %p1034_p13 = scmp.lt.u32.totalorder %s1025_s25, %s1245_s14 }
  0x1b   : > { %p1029_p6 = pneg %p1028_p5  ;;  %p1033_p10 = por %p1032_p7, %p1031_p4 }
  0x1d   : > { %p1035_p12 = por %p1034_p13, %p1033_p10 }
  0x1f   : > { %p1036_p1 = pnand %p1035_p12, %p1029_p6 }
  0x21   : > { %1039 = shalt.err (!%p1036_p1)
}
  0x22   : > { %s1040_s9 = scalar_lea.vmem %s1247_s16, 2048  ;;  %s1139_s12 = smov [#allocation4]  }
  0x23   : > { %p1041_p2 = scmp.ne.s32.totalorder %s1247_s16, %s1040_s9  ;;  %s1045_s13 = sshll.u32 %s1139_s12, 4  ;;  %s1046_s13 = int_to_ptr.vmem [resolvable:$false] %s1045_s13 }
  0x24   : > { %s1047_s15 = scalar_lea.vmem %s1046_s13, 4096  ;;  %p1048_p9 = scmp.lt.s32.totalorder %s1247_s16, %s1046_s13 }
  0x25   : > { %p1043_p5 = pnand %p1041_p2, %p1027_p3  ;;  %p1049_p4 = scmp.lt.s32.totalorder %s1047_s15, %s1040_s9 }
  0x27   : > { %p1044_p11 = pneg %p1043_p5  ;;  %p1050_p7 = por %p1049_p4, %p1048_p9 }
  0x29   : > { %p1051_p10 = pnand %p1050_p7, %p1044_p11 }
  0x2b   : > { %1054 = shalt.err (!%p1051_p10)
}
  0x2c   : > { %s1140_s25 = smov 256   ;;  %s1141_s27 = smov 16  }
  0x2d   : > { %961 = dma.hbm_to_vmem [thread:$0]  (!%p1251_p0), %s1245_s14, 2048, %s1247_s16, %s1256_s24, %s1140_s25, %s1140_s25, %s1141_s27  }
  0x2e   : > { %p222_p12 = scmp.lt.s32.totalorder %s1137_s23, 3  ;;  %p1421_p1 = scmp.ge.s32.totalorder %s1137_s23, 1 }
  0x30   : > { %p223_p3 = pnand %p1421_p1, %p222_p12 }
  0x31   : > { %s1288_s29 = sand.u32 (!%p223_p3), 1, %s1121_s19  }
  0x32   : > { %226 = sbr.rel (%p223_p3) target bundleno = 713 (0x2c9), region = 40  ;;  %s897_s28 = sshll.u32 (!%p223_p3), %s1288_s29, 7 }
  0x33   : > { %s229_s10 = scalar_lea.sflag (!%p223_p3), [#allocation5], %s1288_s29  ;;  %s1292_s11 = scalar_lea.vmem (!%p223_p3), [#allocation4], %s897_s28 }
  0x39   : > { %1108 = dma.done.wait (%p1223_p8), %s229_s10, 2048  }
  0x3a   : > { %1110 = vsyncadd (%p1223_p8), %s229_s10, 4294965248  ;;  %v299_v0 = vld [vmem:[%s1292_s11 + $0x20] sm:$0xff]  ;;  %v300_v1 = vld [vmem:[%s1292_s11 + $0x28] sm:$0xff]  ;;  %v1142_v35 = vmov 0.0|0.0   ;;  %vm1143_vm0 = vmmov 0   ;;  %v1144_v45 = vmov 0.0   ;;  %v506_v49 = vlaneseq }
  0x3b   : > { %v295_v2 = vld [vmem:[%s1292_s11] sm:$0xff]  ;;  %v432_v3 = vadd.f32 %v300_v1, %v299_v0  ;;  %v296_v4 = vld [vmem:[%s1292_s11 + $0x8] sm:$0xff]  ;;  %v301_v5 = vld [vmem:[%s1292_s11 + $0x30] sm:$0xff]  ;;  %v480_v16 = vmax.f32 %v299_v0, %v300_v1  ;;  %942 = vmatprep.subr.bf16.mxu0 %v1142_v35  ;;  %934 = vmatprep.mubr.msk.f32.mxu0 %vm1143_vm0, %v1144_v45  ;;  %vm517_vm1 = vcmask 130112   ;;  %vm524_vm2 = vcmask 195712   ;;  %s903_s15 = sshll.u32 %s1129_s21, 4 }
  0x3c   : > { %v302_v6 = vld [vmem:[%s1292_s11 + $0x38] sm:$0xff]  ;;  %v426_v7 = vadd.f32 %v296_v4, %v295_v2  ;;  %v297_v8 = vld [vmem:[%s1292_s11 + $0x10] sm:$0xff]  ;;  %v474_v13 = vmax.f32 %v295_v2, %v296_v4  ;;  %v303_v14 = vld [vmem:[%s1292_s11 + $0x40] sm:$0xff]  ;;  %937 = vmatprep.subr.mxu1 %v1144_v45  ;;  %939 = vmatprep.mubr.msk.f32.mxu1 %vm1143_vm0, %v1144_v45  ;;  %v507_v52 = vand.u32 127, %v506_v49  ;;  %v509_v56 = vshrl.u32 %v506_v49, 7  ;;  %s257_s25 = scalar_lea.vmem [#allocation7], %s1288_s29 }
  0x3d   : > { %v298_v9 = vld [vmem:[%s1292_s11 + $0x18] sm:$0xff]  ;;  %433 = vadd.xlane.f32.xlu1 %v432_v3  ;;  %v435_v10 = vadd.f32 %v302_v6, %v301_v5  ;;  %v304_v15 = vld [vmem:[%s1292_s11 + $0x48] sm:$0xff]  ;;  %v305_v18 = vld [vmem:[%s1292_s11 + $0x50] sm:$0xff]  ;;  %v483_v20 = vmax.f32 %v301_v5, %v302_v6  ;;  %vm531_vm3 = vcmask 261312   ;;  %vm538_vm4 = vcmask 326912   ;;  %s812_s27 = sshll.u32 %s257_s25, 4  ;;  %s1362_s27 = int_to_ptr.vmem [resolvable:$true] %s812_s27 }
  0x3e   : > { %427 = vadd.xlane.f32.xlu0 %v426_v7  ;;  %v429_v11 = vadd.f32 %v298_v9, %v297_v8  ;;  %v477_v12 = vmax.f32 %v297_v8, %v298_v9  ;;  %v438_v17 = vadd.f32 %v304_v15, %v303_v14  ;;  %v306_v19 = vld [vmem:[%s1292_s11 + $0x58] sm:$0xff]  ;;  %v307_v22 = vld [vmem:[%s1292_s11 + $0x60] sm:$0xff]  ;;  %v308_v23 = vld [vmem:[%s1292_s11 + $0x68] sm:$0xff]  ;;  %v486_v24 = vmax.f32 %v303_v14, %v304_v15  ;;  %s800_s30 = scalar_lea.sflag [#allocation6], %s1288_s29  ;;  %s1055_s14 = scalar_lea.vmem %s1362_s27, 16 }
  0x3f   : > { %v441_v21 = vadd.f32 %v306_v19, %v305_v18  ;;  %v444_v25 = vadd.f32 %v308_v23, %v307_v22  ;;  %v309_v26 = vld [vmem:[%s1292_s11 + $0x70] sm:$0xff]  ;;  %v310_v27 = vld [vmem:[%s1292_s11 + $0x78] sm:$0xff]  ;;  %v489_v28 = vmax.f32 %v305_v18, %v306_v19  ;;  %v492_v31 = vmax.f32 %v307_v22, %v308_v23  ;;  %v612_v32 = vld [vmem:[%s1410_s1] sm:$0xff]  ;;  %s1360_s11 = scalar_lea.hbm %s1414_s5, %s903_s15  ;;  %p1056_p8 = scmp.ne.s32.totalorder %s1362_s27, %s1055_s14 }
  0x40   : > { %v447_v29 = vadd.f32 %v310_v27, %v309_v26  ;;  %v495_v30 = vmax.f32 %v309_v26, %v310_v27  ;;  %v613_v33 = vld [vmem:[%s1410_s1 + $0x8] sm:$0xff]  ;;  %v614_v36 = vld [vmem:[%s1410_s1 + $0x10] sm:$0xff]  ;;  %v615_v37 = vld [vmem:[%s1410_s1 + $0x18] sm:$0xff]  ;;  %v512_v54 = vadd.s32 4294967288, %v507_v52  ;;  %v519_v60 = vadd.s32 4294967280, %v507_v52  ;;  %p1422_p9 = scmp.ne.s32.totalorder %s1418_s6, 0 }
  0x41   : > { %436 = vadd.xlane.f32.xlu1 %v435_v10  ;;  %v943_v34 = vpack.c.bf16 %v613_v33, %v612_v32  ;;  %v946_v38 = vpack.c.bf16 %v615_v37, %v614_v36  ;;  %v616_v39 = vld [vmem:[%s1410_s1 + $0x20] sm:$0xff]  ;;  %v617_v40 = vld [vmem:[%s1410_s1 + $0x28] sm:$0xff]  ;;  %v618_v42 = vld [vmem:[%s1410_s1 + $0x30] sm:$0xff]  ;;  %v510_v62 = vsub.s32 %v507_v52, %v509_v56  ;;  %v526_v0 = vadd.s32 4294967272, %v507_v52  ;;  %s1145_s21 = smov [#allocation7]  }
  0x42   : > { %430 = vadd.xlane.f32.xlu0 %v429_v11  ;;  %v949_v41 = vpack.c.bf16 %v617_v40, %v616_v39  ;;  %v619_v43 = vld [vmem:[%s1410_s1 + $0x38] sm:$0xff]  ;;  %v515_v58 = vsub.s32 %v512_v54, %v509_v56  ;;  %v533_v2 = vadd.s32 4294967264, %v507_v52  ;;  %v540_v3 = vadd.s32 4294967256, %v507_v52  ;;  %p1057_p11 = pnand %p1056_p8, %p1422_p9  ;;  %s1059_s16 = sshll.u32 %s1145_s21, 4  ;;  %s1060_s16 = int_to_ptr.vmem [resolvable:$false] %s1059_s16 }
  0x43   : > { %944 = vmatpush3.bf16.msra.mxu0 %v943_v34  ;;  %v952_v44 = vpack.c.bf16 %v619_v43, %v618_v42  ;;  %v522_v5 = vsub.s32 %v519_v60, %v509_v56  ;;  %v547_v8 = vadd.s32 4294967248, %v507_v52  ;;  %v529_v10 = vsub.s32 %v526_v0, %v509_v56  ;;  %s1061_s17 = scalar_lea.vmem %s1060_s16, 32  ;;  %p1062_p6 = scmp.lt.s32.totalorder %s1362_s27, %s1060_s16 }
  0x44   : > { %945 = vmatprep.subr.bf16.mxu0 %v1142_v35  ;;  %v536_v14 = vsub.s32 %v533_v2, %v509_v56  ;;  %vm545_vm5 = vcmask 392512   ;;  %vm552_vm6 = vcmask 458112   ;;  %vm559_vm7 = vcmask 523712   ;;  %p1058_p0 = pneg %p1057_p11  ;;  %p1063_p13 = scmp.lt.s32.totalorder %s1061_s17, %s1055_s14 }
  0x45   : > { %478 = vmax.xlane.f32.xlu1 %v477_v12  ;;  %v550_v23 = vsub.s32 %v547_v8, %v509_v56  ;;  %vm610_vm8 = vcmask 1040384   ;;  %vm627_vm9 = vcmask 523264   ;;  %vm714_vm10 = vcmask 1043456  }
  0x46   : > { %475 = vmax.xlane.f32.xlu0 %v474_v13  ;;  %v554_v13 = vadd.s32 4294967240, %v507_v52  ;;  %vm710_vm11 = vcmask 31744   ;;  %vm797_vm12 = vcmask 516096   ;;  %p1064_p2 = por %p1063_p13, %p1062_p6 }
  0x47   : > { %947 = vmatpush3.bf16.msra.mxu0 %v946_v38 }
  0x48   : > { %948 = vmatprep.subr.bf16.mxu0 %v1142_v35  ;;  %p1065_p5 = pnand %p1064_p2, %p1058_p0 }
  0x49   : > { %481 = vmax.xlane.f32.xlu1 %v480_v16  ;;  %v543_v16 = vsub.s32 %v540_v3, %v509_v56 }
  0x4a   : > { %439 = vadd.xlane.f32.xlu0 %v438_v17 }
  0x4b   : > { %950 = vmatpush3.bf16.msra.mxu0 %v949_v41 }
  0x4c   : > { %951 = vmatprep.subr.bf16.mxu0 %v1142_v35 }
  0x4d   : > { %484 = vmax.xlane.f32.xlu1 %v483_v20 }
  0x4e   : > { %442 = vadd.xlane.f32.xlu0 %v441_v21 }
  0x4f   : > { %953 = vmatpush3.bf16.msra.mxu0 %v952_v44 }
  0x51   : > { %487 = vmax.xlane.f32.xlu1 %v486_v24 }
  0x52   : > { %445 = vadd.xlane.f32.xlu0 %v444_v25 }
  0x55   : > { %490 = vmax.xlane.f32.xlu1 %v489_v28  ;;  %v557_v28 = vsub.s32 %v554_v13, %v509_v56  ;;  %v898_v56 = vld [vmem:[%s1411_s2] ss:$0 sm:$0xff] }
  0x56   : > { %448 = vadd.xlane.f32.xlu0 %v447_v29 }
  0x59   : > { %496 = vmax.xlane.f32.xlu1 %v495_v30 }
  0x5a   : > { %493 = vmax.xlane.f32.xlu0 %v492_v31 }
  0xca   : > { %v434_v46 = vpop.xlane.xlu1 %433 }
  0xcb   : > { %v428_v47 = vpop.xlane.xlu0 %427  ;;  %v452_v6 = vmul.f32 0.00390625, %v434_v46 }
  0xcc   : > { %v450_v63 = vmul.f32 0.00390625, %v428_v47 }
  0xcd   : > { %v523_v21 = vrot.slane %v452_v6, %v522_v5 }
  0xce   : > { %v437_v48 = vpop.xlane.xlu1 %436  ;;  %v511_v9 = vrot.slane %v450_v63, %v510_v62 }
  0xcf   : > { %v431_v50 = vpop.xlane.xlu0 %430  ;;  %v453_v11 = vmul.f32 0.00390625, %v437_v48 }
  0xd0   : > { %v451_v59 = vmul.f32 0.00390625, %v431_v50 }
  0xd1   : > { %v530_v26 = vrot.slane %v453_v11, %v529_v10 }
  0xd2   : > { %v479_v51 = vpop.xlane.xlu1 %478  ;;  %v516_v4 = vrot.slane %v451_v59, %v515_v58 }
  0xd3   : > { %v476_v53 = vpop.xlane.xlu0 %475  ;;  %v577_v18 = vrot.slane %v479_v51, %v515_v58 }
  0xd4   : > { %v518_v17 = vsel %vm517_vm1, %v516_v4, %v511_v9  ;;  %v573_v19 = vrot.slane %v476_v53, %v510_v62 }
  0xd5   : > { %v525_v30 = vsel %vm524_vm2, %v523_v21, %v518_v17 }
  0xd6   : > { %v482_v55 = vpop.xlane.xlu1 %481  ;;  %v578_v34 = vsel %vm517_vm1, %v577_v18, %v573_v19  ;;  %v532_v40 = vsel %vm531_vm3, %v530_v26, %v525_v30 }
  0xd7   : > { %v440_v57 = vpop.xlane.xlu0 %439  ;;  %v582_v22 = vrot.slane %v482_v55, %v522_v5  ;;  %v702_v55 = vld [vmem:[%s1412_s3] sm:$0xf] }
  0xd8   : > { %v454_v15 = vmul.f32 0.00390625, %v440_v57  ;;  %938 = vmatpush3.msk.msra.mxu1 %vm714_vm10, %v702_v55 }
  0xd9   : > { %v583_v37 = vsel %vm524_vm2, %v582_v22, %v578_v34 }
  0xda   : > { %v485_v61 = vpop.xlane.xlu1 %484  ;;  %v537_v31 = vrot.slane %v454_v15, %v536_v14 }
  0xdb   : > { %v443_v1 = vpop.xlane.xlu0 %442  ;;  %v587_v27 = vrot.slane %v485_v61, %v529_v10  ;;  %v900_v61 = vld [vmem:[%s1413_s4] ss:$0 sm:$0xff] }
  0xdc   : > { %v455_v20 = vmul.f32 0.00390625, %v443_v1  ;;  %v539_v45 = vsel %vm538_vm4, %v537_v31, %v532_v40 }
  0xdd   : > { %v588_v41 = vsel %vm531_vm3, %v587_v27, %v583_v37 }
  0xde   : > { %v488_v7 = vpop.xlane.xlu1 %487  ;;  %v544_v35 = vrot.slane %v455_v20, %v543_v16 }
  0xdf   : > { %v446_v12 = vpop.xlane.xlu0 %445  ;;  %v592_v32 = vrot.slane %v488_v7, %v536_v14 }
  0xe0   : > { %v456_v24 = vmul.f32 0.00390625, %v446_v12  ;;  %v546_v48 = vsel %vm545_vm5, %v544_v35, %v539_v45 }
  0xe1   : > { %v593_v46 = vsel %vm538_vm4, %v592_v32, %v588_v41 }
  0xe2   : > { %v491_v25 = vpop.xlane.xlu1 %490  ;;  %v551_v38 = vrot.slane %v456_v24, %v550_v23 }
  0xe3   : > { %v449_v29 = vpop.xlane.xlu0 %448  ;;  %v597_v36 = vrot.slane %v491_v25, %v543_v16 }
  0xe4   : > { %v457_v33 = vmul.f32 0.00390625, %v449_v29  ;;  %v553_v50 = vsel %vm552_vm6, %v551_v38, %v546_v48 }
  0xe5   : > { %v598_v49 = vsel %vm545_vm5, %v597_v36, %v593_v46 }
  0xe6   : > { %v497_v39 = vpop.xlane.xlu1 %496  ;;  %v558_v42 = vrot.slane %v457_v33, %v557_v28 }
  0xe7   : > { %v494_v43 = vpop.xlane.xlu0 %493  ;;  %v607_v44 = vrot.slane %v497_v39, %v557_v28 }
  0xe8   : > { %v602_v47 = vrot.slane %v494_v43, %v550_v23  ;;  %v560_v53 = vsel %vm559_vm7, %v558_v42, %v553_v50 }
  0xea   : > { %v603_v51 = vsel %vm552_vm6, %v602_v47, %v598_v49 }
  0xeb   : > { %v608_v52 = vsel %vm559_vm7, %v607_v44, %v603_v51 }
  0xec   : > { %v611_v54 = vsel %vm610_vm8, %v560_v53, %v608_v52 }
  0xed   : > { %935 = vmatmul.mubr.msk.f32.vlgmr.msra.gmra.mrb[0].mxu0 %vm627_vm9, %v611_v54 }
 0x1c0   : > { %v697_v57 = vpop.f32.mrb[0].mxu0 }
 0x1c1   : > { %v698_v58 = vadd.f32 %v898_v56, %v697_v57  ;;  %v936_v59 = vpop.f32.mrb[1].mxu0 }
 0x1c3   : > { %v701_v60 = vmax.f32 %v698_v58, 0.0 }
 0x1c5   : > { %940 = vmatmul.mubr.msk.f32.vlgmr.msra.gmra.mrb[0].mxu1 %vm710_vm11, %v701_v60 }
 0x298   : > { %v784_v62 = vpop.f32.mrb[0].mxu1 }
 0x299   : > { %v785_v63 = vadd.f32 %v900_v61, %v784_v62  ;;  %v941_v0 = vpop.f32.mrb[1].mxu1 }
 0x29b   : > { %v789_v1 = vrot.slane %v785_v63, 1 }
 0x29d   : > { %v791_v2 = vadd.f32 %v789_v1, %v785_v63 }
 0x29f   : > { %v792_v3 = vsub.f32 0.0, %v791_v2 }
 0x2a1   : > { %v793_v4 = vmul.f32 1.442695, %v792_v3 }
 0x2a3   : > { %1021 = vpow2.f32 %v793_v4 }
 0x2ad   : > { %v1022_v5 = vpop.eup %1021 }
 0x2ae   : > { %v795_v6 = vadd.f32 1.0, %v1022_v5 }
 0x2b0   : > { %1023 = vrcp.f32 %v795_v6 }
 0x2ba   : > { %v1024_v7 = vpop.eup %1023 }
 0x2bb   : > { %798 = vst.msk [vmem:[%s257_s25] sm:$0x1] %vm797_vm12, %v1024_v7 }
 0x2bc   : > { %1068 = shalt.err (!%p1065_p5)
}
 0x2bd   : > { %s1069_s29 = scalar_lea.hbm %s1360_s11, 16  ;;  %s1073_s12 = scalar_lea.hbm %s1414_s5, 32 }
 0x2be   : > { %p1070_p4 = scmp.ne.s32.totalorder %s1360_s11, %s1069_s29  ;;  %p1074_p12 = scmp.lt.u32.totalorder %s1360_s11, %s1414_s5 }
 0x2bf   : > { %p1075_p1 = scmp.lt.u32.totalorder %s1073_s12, %s1069_s29  ;;  %p1077_p8 = scmp.lt.u32.totalorder %s1069_s29, %s1360_s11 }
 0x2c0   : > { %p1071_p7 = pnand %p1070_p4, %p1422_p9 }
 0x2c1   : > { %p1076_p3 = por %p1075_p1, %p1074_p12 }
 0x2c2   : > { %p1072_p10 = pneg %p1071_p7 }
 0x2c3   : > { %p1078_p11 = por %p1077_p8, %p1076_p3 }
 0x2c5   : > { %p1079_p0 = pnand %p1078_p11, %p1072_p10 }
 0x2c7   : > { %1082 = shalt.err (!%p1079_p0)
}
 0x2c8   : > { %956 = dma.vmem_to_hbm [thread:$0]  (%p1422_p9), %s1362_s27, 16, %s1360_s11, %s800_s30  }
 0x2c9 PF: > { %s824_s25 = sand.u32 1, %s1117_s18   ;;  %p1423_p6 = scmp.ne.s32.totalorder %s1419_s8, 0 }
 0x2ca   : > { %p1424_p13 = scmp.ge.s32.totalorder %s1137_s23, 2  ;;  %s825_s28 = scalar_lea.sflag [#allocation6], %s824_s25 }
 0x2cc   : > { %p963_p2 = pnand %p1424_p13, %p1423_p6 }
 0x2ce   : > { %1112 = dma.done.wait (!%p963_p2), %s825_s28, 16  }
 0x2cf   : > { %1114 = vsyncadd (!%p963_p2), %s825_s28, 4294967280  ;;  %s21_s23 = sadd.s32 1, %s1137_s23   ;;  %s1425_s18 = smov %s1121_s19 }
 0x2d0   : > { %p18_p5 = scmp.ge.s32.totalorder %s21_s23, 4   ;;  %s1426_s19 = smov %s1125_s20 }
 0x2d1   : > { %s1427_s20 = smov %s1232_s7  ;;  %s1428_s21 = smov %s1133_s22 }
 0x2d2   : > { %s1429_s22 = smov %s1431_s26  ;;  %20 = sbr.rel (!%p18_p5) target bundleno = 6 (0x6), region = 93 }
 0x2d9   :  { %829 = vsyncpa [#allocation5], 1 }
 0x2da   :  { %831 = vsyncpa [#allocation5 + $0x1], 1 }
 0x2db   :  { %832 = vsyncpa [#allocation6], 1 }
 0x2dc   :  { %834 = vsyncpa [#allocation6 + $0x1], 1 }

</bundles_post_ra>
